<compile_context>
chip_gen: v5e
topology: v5e:2x2
jax: 0.10.0
libtpu: 0.0.40
codegen_flags: <defaults>
</compile_context>

<pallas_src>
import functools
import math

import numpy as np

import jax
import jax.numpy as jnp
from jax import lax
from jax.experimental import pallas as pl
from jax.experimental.pallas import tpu as pltpu


# ---------------------------------------------------------------------------
# Hardware-aware budgets.
# ---------------------------------------------------------------------------
def _vmem_capacity_bytes():
    try:
        return int(pltpu.get_tpu_info().vmem_capacity_bytes)
    except Exception:
        return 64 * 1024 * 1024  # v7x per-core VMEM = smallest current generation


_VMEM_CAP = _vmem_capacity_bytes()
_VMEM_BUDGET = int(0.80 * _VMEM_CAP)          # headroom for compiler scratch
_TARGET_STEP_BYTES = 2 << 20                  # measured DMA sweet spot (~1-4 MiB)
_PERM_MATRIX_MAX_BYTES = 4 << 20              # cap on the H/W relayout matrix (bf16)


def _divisors_desc(n):
    return [d for d in range(n, 0, -1) if n % d == 0]


def _compiler_params(step_bytes, n_grid_axes, extra_bytes=0):
    """Parallel grid semantics + explicit VMEM limit (defaults differ per chip)."""
    needed = 2 * step_bytes + extra_bytes + (2 << 20)     # 2x: double buffering
    limit = int(min(max(needed, 8 << 20), _VMEM_BUDGET))
    sem = ("parallel",) * (n_grid_axes - 1) + ("arbitrary",)
    return pltpu.CompilerParams(dimension_semantics=sem, vmem_limit_bytes=limit)


# ---------------------------------------------------------------------------
# Block-size heuristic for the lane-dense paths.
# ---------------------------------------------------------------------------
def _choose_lane_dense_blocks(*, No, C, Co, D, Do, Lin, Lout, itemsize,
                              max_step_bytes, max_cb):
    """Returns (Cb, Db, chunked).

    Cb: channels fused per block (1 whenever C itself is padded).
    Db: output-D rows per block when `chunked` (multiple of 8); else full D/Do.
    """
    base_step = (D * Lin + Do * Lout) * itemsize          # Cb = 1, full-D step
    if base_step > max_step_bytes:
        # A full-D block would blow the per-block VMEM budget: chunk D.
        # TODO(synk): also chunk the flattened H*W axis for extremely wide slabs.
        per_row = (Lin + Lout) * itemsize
        db = max(8, (max_step_bytes // per_row) // 8 * 8)
        if db < Do:
            return 1, int(db), True
        return 1, Do, False

    cb = 1
    if Co == C and C > 1:
        step_cap = min(max_step_bytes, max(_TARGET_STEP_BYTES, base_step))
        for div in _divisors_desc(C):
            if div <= max_cb and div * base_step <= step_cap:
                cb = div
                break

    # v7x megacore: keep >= 2 grid steps when the volume is big enough so both
    # TensorCores ("parallel" axes) contribute DMA bandwidth.
    c_steps = Co if Co > C else C // cb
    total_out_bytes = No * Co * Do * Lout * itemsize
    if No * c_steps == 1 and total_out_bytes >= (2 << 20):
        if Co == C and C > 1:
            cb = _divisors_desc(C)[1]              # largest proper divisor
        elif Do >= 16:
            db = max(8, ((Do // 2) + 7) // 8 * 8)
            if db >= Do:
                db = max(8, ((Do - 1) // 8) * 8)
            if 0 < db < Do:
                return cb, int(db), True
    return cb, Do, False


# ---------------------------------------------------------------------------
# Lane-dense kernel (covers D-only padding and MXU-relayout H/W padding).
# ---------------------------------------------------------------------------
def _make_lane_dense_kernel(*, N, No, C, Co, D, Do, Lout, Cb, Db, chunked,
                            use_perm, out_dtype):
    pad_d = Do > D
    guard_n = No > N
    guard_c = Co > C

    def permute(x_rows, p_ref):
        # Exact lane relayout on the MXU: x @ P with a one-hot (Lin, Lout)
        # matrix.  The f32 value is split into 3 bf16 terms so only native
        # bf16 matmuls are used; accumulating (lo + mid) + hi reconstructs the
        # f32 value bit-exactly (each product is x_part * 1.0 plus exact 0s).
        # Note: f32 subnormals below bf16's subnormal range (and +/-inf, which
        # becomes NaN via inf-inf) are not reproduced; real activations never
        # hit those.
        p = p_ref[...]
        xf = x_rows.astype(jnp.float32)
        hi = xf.astype(jnp.bfloat16)
        r1 = xf - hi.astype(jnp.float32)
        mid = r1.astype(jnp.bfloat16)
        lo = (r1 - mid.astype(jnp.float32)).astype(jnp.bfloat16)
        acc = jnp.dot(lo, p, preferred_element_type=jnp.float32)
        acc = acc + jnp.dot(mid, p, preferred_element_type=jnp.float32)
        acc = acc + jnp.dot(hi, p, preferred_element_type=jnp.float32)
        return acc

    def store_rows(x_ref, p_ref, o_ref, rows, valid_rows):
        # Write rows [0, rows) of the current output block; rows >= valid_rows
        # (dynamic; used when the D boundary falls inside the block) are zero.
        if use_perm:
            for ci in range(Cb):
                yi = permute(x_ref[ci, :rows, :], p_ref)          # (rows, Lout)
                if valid_rows is not None:
                    ridx = lax.broadcasted_iota(jnp.int32, (rows, Lout), 0)
                    yi = jnp.where(ridx < valid_rows, yi, 0.0)
                o_ref[ci, :rows, :] = yi.astype(out_dtype)
        else:
            yi = x_ref[:, :rows, :]
            if valid_rows is not None:
                ridx = lax.broadcasted_iota(jnp.int32, (Cb, rows, Lout), 1)
                yi = jnp.where(ridx < valid_rows, yi, jnp.zeros_like(yi))
            o_ref[:, :rows, :] = yi

    def data_block(x_ref, p_ref, o_ref):
        if not chunked:
            store_rows(x_ref, p_ref, o_ref, D, None)
            if pad_d:
                # Plain trailing store for the D-pad (no masked full-block store).
                o_ref[:, D:, :] = jnp.zeros((Cb, Do - D, Lout), out_dtype)
        elif not pad_d:
            store_rows(x_ref, p_ref, o_ref, Db, None)
        else:
            d0 = pl.program_id(2) * Db

            @pl.when(d0 + Db <= D)
            def _():
                store_rows(x_ref, p_ref, o_ref, Db, None)

            @pl.when(d0 >= D)
            def _():
                o_ref[...] = jnp.zeros(o_ref.shape, out_dtype)

            @pl.when(jnp.logical_and(d0 < D, d0 + Db > D))
            def _():
                store_rows(x_ref, p_ref, o_ref, Db, D - d0)

    def kernel(*refs):
        if use_perm:
            p_ref, x_ref, o_ref = refs
        else:
            x_ref, o_ref = refs
            p_ref = None

        if not (guard_n or guard_c):
            data_block(x_ref, p_ref, o_ref)
            return

        conds = []
        if guard_n:
            conds.append(pl.program_id(0) < N)
        if guard_c:
            conds.append(pl.program_id(1) < C)
        in_range = conds[0]
        for cnd in conds[1:]:
            in_range = jnp.logical_and(in_range, cnd)

        @pl.when(in_range)
        def _():
            data_block(x_ref, p_ref, o_ref)

        @pl.when(jnp.logical_not(in_range))
        def _():
            o_ref[...] = jnp.zeros(o_ref.shape, out_dtype)

    return kernel


def _lane_dense_index_maps(*, N, No, C, Co, D, Cb, Db, chunked):
    guard_n = No > N
    guard_c = Co > C
    d_in_steps = -(-D // Db) if chunked else 1
    c_pin = (C - 1) if guard_c else (C // Cb - 1)

    def in_map(n, c, d):
        n_in = jnp.minimum(n, N - 1) if guard_n else n
        c_in = jnp.minimum(c, C - 1) if guard_c else c
        d_in = jnp.minimum(d, d_in_steps - 1) if chunked else 0
        if guard_n or guard_c:
            oob = None
            if guard_n:
                oob = n >= N
            if guard_c:
                c_oob = c >= C
                oob = c_oob if oob is None else jnp.logical_or(oob, c_oob)
            # Pin every pure-pad step onto ONE fixed input block so Pallas can
            # skip the input fetch across the whole pad region.
            n_in = jnp.where(oob, N - 1, n_in)
            c_in = jnp.where(oob, c_pin, c_in)
            d_in = jnp.where(oob, d_in_steps - 1, d_in)
        return (n_in, c_in, d_in, 0)

    def out_map(n, c, d):
        return (n, c, d, 0)

    return in_map, out_map


def _relayout_matrix(H, W, Ho, Wo):
    # One-hot map from flattened (H, W) lanes to flattened (Ho, Wo) lanes:
    # column h*Wo + w receives row h*W + w; all other columns are zero.
    src = np.arange(H * W)
    h, w = src // W, src % W
    p = np.zeros((H * W, Ho * Wo), np.float32)
    p[src, h * Wo + w] = 1.0
    return jnp.asarray(p, dtype=jnp.bfloat16)   # 0.0 / 1.0 are exact in bf16


# ---------------------------------------------------------------------------
# Fallback NCDHW kernel (integer dtypes / oversized relayout matrix).
# ---------------------------------------------------------------------------
def _fallback_ncdhw(x, out_shape):
    # TODO(synk): lane-dense relayout + D-chunking for this rare fallback too.
    N, C, D, H, W = x.shape
    No, Co, Do, Ho, Wo = out_shape
    dtype = x.dtype
    guard_n, guard_c = No > N, Co > C

    def kernel(x_ref, o_ref):
        def copy_block():
            o_ref[:D, :H, :W] = x_ref[...]
            if Wo > W:
                o_ref[:D, :H, W:] = jnp.zeros((D, H, Wo - W), dtype)
            if Ho > H:
                o_ref[:D, H:, :] = jnp.zeros((D, Ho - H, Wo), dtype)
            if Do > D:
                o_ref[D:, :, :] = jnp.zeros((Do - D, Ho, Wo), dtype)

        if not (guard_n or guard_c):
            copy_block()
            return
        conds = []
        if guard_n:
            conds.append(pl.program_id(0) < N)
        if guard_c:
            conds.append(pl.program_id(1) < C)
        in_range = conds[0]
        for cnd in conds[1:]:
            in_range = jnp.logical_and(in_range, cnd)

        @pl.when(in_range)
        def _():
            copy_block()

        @pl.when(jnp.logical_not(in_range))
        def _():
            o_ref[...] = jnp.zeros(o_ref.shape, dtype)

    def in_map(n, c):
        n_in = jnp.minimum(n, N - 1) if guard_n else n
        c_in = jnp.minimum(c, C - 1) if guard_c else c
        if guard_n or guard_c:
            oob = None
            if guard_n:
                oob = n >= N
            if guard_c:
                c_oob = c >= C
                oob = c_oob if oob is None else jnp.logical_or(oob, c_oob)
            n_in = jnp.where(oob, N - 1, n_in)
            c_in = jnp.where(oob, C - 1, c_in)
        return (n_in, c_in, 0, 0, 0)

    itemsize = dtype.itemsize
    step_bytes = (D * H * W + Do * Ho * Wo) * itemsize
    cost = pl.CostEstimate(
        flops=0, transcendentals=0,
        bytes_accessed=(math.prod(x.shape) + math.prod(out_shape)) * itemsize)
    return pl.pallas_call(
        kernel,
        out_shape=jax.ShapeDtypeStruct(out_shape, dtype),
        grid=(No, Co),
        in_specs=[pl.BlockSpec((None, None, D, H, W), in_map)],
        out_specs=pl.BlockSpec((None, None, Do, Ho, Wo),
                               lambda n, c: (n, c, 0, 0, 0)),
        compiler_params=_compiler_params(step_bytes, 2),
        cost_estimate=cost,
    )(x)


# ---------------------------------------------------------------------------
# Public wrapper.
# ---------------------------------------------------------------------------
@functools.partial(jax.jit, static_argnums=1)
def consistent_output_shape_3d(x, min_output_shape):
    """Pallas equivalent of ConsistentOutputShape3DLayer.forward (NCDHW)."""
    in_shape = tuple(int(s) for s in x.shape)
    mins = tuple(int(m) for m in min_output_shape)
    if len(in_shape) != 5 or len(mins) != 5:
        raise ValueError("expected 5-D NCDHW input and 5-long min_output_shape")
    out_shape = tuple(max(m, s) for m, s in zip(mins, in_shape))
    if out_shape == in_shape:            # static fast path: nothing to pad
        return x

    N, C, D, H, W = in_shape
    No, Co, Do, Ho, Wo = out_shape
    dtype = x.dtype
    itemsize = dtype.itemsize
    Lin, Lout = H * W, Ho * Wo
    pad_hw = (Ho > H) or (Wo > W)

    use_perm = bool(pad_hw
                    and jnp.issubdtype(dtype, jnp.floating)
                    and Lin * Lout * 2 <= _PERM_MATRIX_MAX_BYTES)
    if pad_hw and not use_perm:
        return _fallback_ncdhw(x, out_shape)

    # ---------------- lane-dense paths ----------------
    x4 = x.reshape(N, C, D, Lin)                 # free: merges contiguous dims
    max_step = min(_VMEM_BUDGET // (8 if use_perm else 4),
                   (8 << 20) if use_perm else (12 << 20))
    Cb, Db, chunked = _choose_lane_dense_blocks(
        No=No, C=C, Co=Co, D=D, Do=Do, Lin=Lin, Lout=Lout, itemsize=itemsize,
        max_step_bytes=max_step, max_cb=8 if use_perm else C)
    Db_in = Db if chunked else D
    Db_out = Db if chunked else Do
    c_steps = Co if Co > C else C // Cb
    d_steps = -(-Do // Db_out)
    grid = (No, c_steps, d_steps)

    in_map, out_map = _lane_dense_index_maps(
        N=N, No=No, C=C, Co=Co, D=D, Cb=Cb, Db=Db, chunked=chunked)
    x_spec = pl.BlockSpec((None, Cb, Db_in, Lin), in_map)
    o_spec = pl.BlockSpec((None, Cb, Db_out, Lout), out_map)

    kernel = _make_lane_dense_kernel(
        N=N, No=No, C=C, Co=Co, D=D, Do=Do, Lout=Lout, Cb=Cb, Db=Db,
        chunked=chunked, use_perm=use_perm, out_dtype=dtype)

    in_block = Cb * Db_in * Lin * itemsize
    out_block = Cb * Db_out * Lout * itemsize
    step_bytes = in_block + out_block
    in_specs = [x_spec]
    operands = [x4]
    extra = 0
    flops = 0
    if use_perm:
        p_mat = _relayout_matrix(H, W, Ho, Wo)
        in_specs = [pl.BlockSpec((Lin, Lout), lambda n, c, d: (0, 0)), x_spec]
        operands = [p_mat, x4]
        # relayout matrix (2 buffers) + f32 staging / bf16 split temporaries
        extra = 2 * (Lin * Lout * 2) + 4 * (Cb * Db_in * Lin * 4)
        flops = 6 * N * C * D * Lin * Lout        # 3 bf16 MXU passes

    cost = pl.CostEstimate(
        flops=flops, transcendentals=0,
        bytes_accessed=(math.prod(in_shape) + math.prod(out_shape)) * itemsize)

    out4 = pl.pallas_call(
        kernel,
        out_shape=jax.ShapeDtypeStruct((No, Co, Do, Lout), dtype),
        grid=grid,
        in_specs=in_specs,
        out_specs=o_spec,
        compiler_params=_compiler_params(step_bytes, 3, extra),
        cost_estimate=cost,
    )(*operands)
    return out4.reshape(No, Co, Do, Ho, Wo)


# ---------------------------------------------------------------------------
# Self-test.
# ---------------------------------------------------------------------------
if __name__ == "__main__":
    key = jax.random.PRNGKey(0)

    def ref_pad(arr, mins):
        pads = [(0, max(0, m - s)) for m, s in zip(mins, arr.shape)]
        return jnp.pad(arr, pads)

    float_tests = [
        ((2, 4, 6, 10, 12), (2, 4, 8, 16, 16)),      # MXU relayout: D/H/W pad
        ((2, 3, 5, 8, 128), (2, 3, 8, 8, 128)),      # lane-dense: D pad only
        ((2, 2, 3, 6, 10), (3, 4, 4, 8, 16)),        # every dim padded (N/C guard)
        ((1, 2, 3, 8, 128), (2, 3, 4, 8, 128)),      # N/C guard on D-only path
        ((2, 4, 6, 10, 12), (1, 1, 8, 8, 20)),       # mixed: some mins smaller
        ((2, 4, 8, 16, 16), (1, 1, 4, 8, 8)),        # no padding: passthrough
        ((1, 1, 64, 64, 128), (1, 1, 70, 64, 128)),  # D-chunked grid + straddle
        ((1, 1, 512, 16, 60), (1, 1, 520, 16, 64)),  # D-chunked + MXU relayout
    ]

    for shp, mins in float_tests:
        key, sub = jax.random.split(key)
        x = jax.random.normal(sub, shp, dtype=jnp.float32)
        out = jax.block_until_ready(consistent_output_shape_3d(x, mins))
        ref = ref_pad(x, mins)
        assert out.shape == ref.shape and out.dtype == x.dtype, (shp, mins)
        assert bool(jnp.array_equal(out, ref)), f"mismatch for {shp} -> {mins}"

    # bfloat16 through the MXU-relayout path.
    key, sub = jax.random.split(key)
    xb = jax.random.normal(sub, (1, 2, 4, 6, 10), jnp.float32).astype(jnp.bfloat16)
    outb = jax.block_until_ready(consistent_output_shape_3d(xb, (1, 2, 6, 8, 16)))
    assert bool(jnp.array_equal(outb, ref_pad(xb, (1, 2, 6, 8, 16))))

    # Integer dtype exercises the NCDHW fallback path.
    key, sub = jax.random.split(key)
    xi = jax.random.randint(sub, (1, 2, 3, 4, 6), -100, 100, dtype=jnp.int32)
    outi = jax.block_until_ready(consistent_output_shape_3d(xi, (1, 2, 5, 6, 8)))
    assert bool(jnp.array_equal(outi, ref_pad(xi, (1, 2, 5, 6, 8))))

    print("KERNEL_OK")
</pallas_src>

<mosaic_0001>
module attributes {stable_mosaic.version = 11 : i64} {
  func.func @kernel(%arg0: i32, %arg1: i32, %arg2: i32, %arg3: memref<120x256xbf16, #tpu.memory_space<vmem>>, %arg4: memref<1x4x6x120xf32, #tpu.memory_space<vmem>>, %arg5: memref<1x4x8x256xf32, #tpu.memory_space<vmem>>) attributes {dimension_semantics = [#tpu.dimension_semantics<parallel>, #tpu.dimension_semantics<parallel>, #tpu.dimension_semantics<arbitrary>], iteration_bounds = array<i64: 2, 1, 1>, scalar_prefetch = 0 : i64, scratch_operands = 0 : i64, tpu.core_type = #tpu.core_type<tc>, window_params = [{pipeline_mode = #tpu.pipeline_mode<synchronous>, transform_indices = @transform_0, window_bounds = array<i64: 120, 256>}, {transform_indices = @transform_1, window_bounds = array<i64: 1, 4, 6, 120>}, {transform_indices = @transform_2, window_bounds = array<i64: 1, 4, 8, 256>}]} {
    %c0 = arith.constant 0 : index
    %c0_0 = arith.constant 0 : index
    %c0_1 = arith.constant 0 : index
    %c0_2 = arith.constant 0 : index
    %0 = vector.load %arg4[%c0, %c0_0, %c0_1, %c0_2] : memref<1x4x6x120xf32, #tpu.memory_space<vmem>>, vector<1x1x6x120xf32>
    %1 = vector.shape_cast %0 : vector<1x1x6x120xf32> to vector<6x120xf32>
    %c0_3 = arith.constant 0 : index
    %c0_4 = arith.constant 0 : index
    %2 = vector.load %arg3[%c0_3, %c0_4] : memref<120x256xbf16, #tpu.memory_space<vmem>>, vector<120x256xbf16>
    %3 = arith.truncf %1 : vector<6x120xf32> to vector<6x120xbf16>
    %4 = arith.extf %3 : vector<6x120xbf16> to vector<6x120xf32>
    %5 = arith.subf %1, %4 : vector<6x120xf32>
    %6 = arith.truncf %5 : vector<6x120xf32> to vector<6x120xbf16>
    %7 = arith.extf %6 : vector<6x120xbf16> to vector<6x120xf32>
    %8 = arith.subf %5, %7 : vector<6x120xf32>
    %9 = arith.truncf %8 : vector<6x120xf32> to vector<6x120xbf16>
    %cst = arith.constant dense<0.000000e+00> : vector<6x256xf32>
    %10 = tpu.matmul %9, %2, %cst {dimension_numbers = #tpu.dot_dimension_numbers<[1], [0], [0], [1], [0, 0, 1, 1], [], []>} : vector<6x120xbf16>, vector<120x256xbf16>, vector<6x256xf32> -> vector<6x256xf32>
    %cst_5 = arith.constant dense<0.000000e+00> : vector<6x256xf32>
    %11 = tpu.matmul %6, %2, %cst_5 {dimension_numbers = #tpu.dot_dimension_numbers<[1], [0], [0], [1], [0, 0, 1, 1], [], []>} : vector<6x120xbf16>, vector<120x256xbf16>, vector<6x256xf32> -> vector<6x256xf32>
    %12 = arith.addf %10, %11 : vector<6x256xf32>
    %cst_6 = arith.constant dense<0.000000e+00> : vector<6x256xf32>
    %13 = tpu.matmul %3, %2, %cst_6 {dimension_numbers = #tpu.dot_dimension_numbers<[1], [0], [0], [1], [0, 0, 1, 1], [], []>} : vector<6x120xbf16>, vector<120x256xbf16>, vector<6x256xf32> -> vector<6x256xf32>
    %14 = arith.addf %12, %13 : vector<6x256xf32>
    %c0_7 = arith.constant 0 : index
    %c0_8 = arith.constant 0 : index
    %c0_9 = arith.constant 0 : index
    %c0_10 = arith.constant 0 : index
    %15 = vector.load %arg5[%c0_7, %c0_8, %c0_9, %c0_10] : memref<1x4x8x256xf32, #tpu.memory_space<vmem>>, vector<1x1x6x256xf32>
    %16 = vector.shape_cast %15 : vector<1x1x6x256xf32> to vector<6x256xf32>
    %17 = vector.shape_cast %14 : vector<6x256xf32> to vector<1x1x6x256xf32>
    tpu.vector_store %arg5[%c0_7, %c0_8, %c0_9, %c0_10], %17 {strides = array<i32>} : memref<1x4x8x256xf32, #tpu.memory_space<vmem>>, vector<1x1x6x256xf32>,
    %c0_11 = arith.constant 0 : index
    %c1 = arith.constant 1 : index
    %c0_12 = arith.constant 0 : index
    %c0_13 = arith.constant 0 : index
    %18 = vector.load %arg4[%c0_11, %c1, %c0_12, %c0_13] : memref<1x4x6x120xf32, #tpu.memory_space<vmem>>, vector<1x1x6x120xf32>
    %19 = vector.shape_cast %18 : vector<1x1x6x120xf32> to vector<6x120xf32>
    %c0_14 = arith.constant 0 : index
    %c0_15 = arith.constant 0 : index
    %20 = vector.load %arg3[%c0_14, %c0_15] : memref<120x256xbf16, #tpu.memory_space<vmem>>, vector<120x256xbf16>
    %21 = arith.truncf %19 : vector<6x120xf32> to vector<6x120xbf16>
    %22 = arith.extf %21 : vector<6x120xbf16> to vector<6x120xf32>
    %23 = arith.subf %19, %22 : vector<6x120xf32>
    %24 = arith.truncf %23 : vector<6x120xf32> to vector<6x120xbf16>
    %25 = arith.extf %24 : vector<6x120xbf16> to vector<6x120xf32>
    %26 = arith.subf %23, %25 : vector<6x120xf32>
    %27 = arith.truncf %26 : vector<6x120xf32> to vector<6x120xbf16>
    %cst_16 = arith.constant dense<0.000000e+00> : vector<6x256xf32>
    %28 = tpu.matmul %27, %20, %cst_16 {dimension_numbers = #tpu.dot_dimension_numbers<[1], [0], [0], [1], [0, 0, 1, 1], [], []>} : vector<6x120xbf16>, vector<120x256xbf16>, vector<6x256xf32> -> vector<6x256xf32>
    %cst_17 = arith.constant dense<0.000000e+00> : vector<6x256xf32>
    %29 = tpu.matmul %24, %20, %cst_17 {dimension_numbers = #tpu.dot_dimension_numbers<[1], [0], [0], [1], [0, 0, 1, 1], [], []>} : vector<6x120xbf16>, vector<120x256xbf16>, vector<6x256xf32> -> vector<6x256xf32>
    %30 = arith.addf %28, %29 : vector<6x256xf32>
    %cst_18 = arith.constant dense<0.000000e+00> : vector<6x256xf32>
    %31 = tpu.matmul %21, %20, %cst_18 {dimension_numbers = #tpu.dot_dimension_numbers<[1], [0], [0], [1], [0, 0, 1, 1], [], []>} : vector<6x120xbf16>, vector<120x256xbf16>, vector<6x256xf32> -> vector<6x256xf32>
    %32 = arith.addf %30, %31 : vector<6x256xf32>
    %c0_19 = arith.constant 0 : index
    %c1_20 = arith.constant 1 : index
    %c0_21 = arith.constant 0 : index
    %c0_22 = arith.constant 0 : index
    %33 = vector.load %arg5[%c0_19, %c1_20, %c0_21, %c0_22] : memref<1x4x8x256xf32, #tpu.memory_space<vmem>>, vector<1x1x6x256xf32>
    %34 = vector.shape_cast %33 : vector<1x1x6x256xf32> to vector<6x256xf32>
    %35 = vector.shape_cast %32 : vector<6x256xf32> to vector<1x1x6x256xf32>
    tpu.vector_store %arg5[%c0_19, %c1_20, %c0_21, %c0_22], %35 {strides = array<i32>} : memref<1x4x8x256xf32, #tpu.memory_space<vmem>>, vector<1x1x6x256xf32>,
    %c0_23 = arith.constant 0 : index
    %c2 = arith.constant 2 : index
    %c0_24 = arith.constant 0 : index
    %c0_25 = arith.constant 0 : index
    %36 = vector.load %arg4[%c0_23, %c2, %c0_24, %c0_25] : memref<1x4x6x120xf32, #tpu.memory_space<vmem>>, vector<1x1x6x120xf32>
    %37 = vector.shape_cast %36 : vector<1x1x6x120xf32> to vector<6x120xf32>
    %c0_26 = arith.constant 0 : index
    %c0_27 = arith.constant 0 : index
    %38 = vector.load %arg3[%c0_26, %c0_27] : memref<120x256xbf16, #tpu.memory_space<vmem>>, vector<120x256xbf16>
    %39 = arith.truncf %37 : vector<6x120xf32> to vector<6x120xbf16>
    %40 = arith.extf %39 : vector<6x120xbf16> to vector<6x120xf32>
    %41 = arith.subf %37, %40 : vector<6x120xf32>
    %42 = arith.truncf %41 : vector<6x120xf32> to vector<6x120xbf16>
    %43 = arith.extf %42 : vector<6x120xbf16> to vector<6x120xf32>
    %44 = arith.subf %41, %43 : vector<6x120xf32>
    %45 = arith.truncf %44 : vector<6x120xf32> to vector<6x120xbf16>
    %cst_28 = arith.constant dense<0.000000e+00> : vector<6x256xf32>
    %46 = tpu.matmul %45, %38, %cst_28 {dimension_numbers = #tpu.dot_dimension_numbers<[1], [0], [0], [1], [0, 0, 1, 1], [], []>} : vector<6x120xbf16>, vector<120x256xbf16>, vector<6x256xf32> -> vector<6x256xf32>
    %cst_29 = arith.constant dense<0.000000e+00> : vector<6x256xf32>
    %47 = tpu.matmul %42, %38, %cst_29 {dimension_numbers = #tpu.dot_dimension_numbers<[1], [0], [0], [1], [0, 0, 1, 1], [], []>} : vector<6x120xbf16>, vector<120x256xbf16>, vector<6x256xf32> -> vector<6x256xf32>
    %48 = arith.addf %46, %47 : vector<6x256xf32>
    %cst_30 = arith.constant dense<0.000000e+00> : vector<6x256xf32>
    %49 = tpu.matmul %39, %38, %cst_30 {dimension_numbers = #tpu.dot_dimension_numbers<[1], [0], [0], [1], [0, 0, 1, 1], [], []>} : vector<6x120xbf16>, vector<120x256xbf16>, vector<6x256xf32> -> vector<6x256xf32>
    %50 = arith.addf %48, %49 : vector<6x256xf32>
    %c0_31 = arith.constant 0 : index
    %c2_32 = arith.constant 2 : index
    %c0_33 = arith.constant 0 : index
    %c0_34 = arith.constant 0 : index
    %51 = vector.load %arg5[%c0_31, %c2_32, %c0_33, %c0_34] : memref<1x4x8x256xf32, #tpu.memory_space<vmem>>, vector<1x1x6x256xf32>
    %52 = vector.shape_cast %51 : vector<1x1x6x256xf32> to vector<6x256xf32>
    %53 = vector.shape_cast %50 : vector<6x256xf32> to vector<1x1x6x256xf32>
    tpu.vector_store %arg5[%c0_31, %c2_32, %c0_33, %c0_34], %53 {strides = array<i32>} : memref<1x4x8x256xf32, #tpu.memory_space<vmem>>, vector<1x1x6x256xf32>,
    %c0_35 = arith.constant 0 : index
    %c3 = arith.constant 3 : index
    %c0_36 = arith.constant 0 : index
    %c0_37 = arith.constant 0 : index
    %54 = vector.load %arg4[%c0_35, %c3, %c0_36, %c0_37] : memref<1x4x6x120xf32, #tpu.memory_space<vmem>>, vector<1x1x6x120xf32>
    %55 = vector.shape_cast %54 : vector<1x1x6x120xf32> to vector<6x120xf32>
    %c0_38 = arith.constant 0 : index
    %c0_39 = arith.constant 0 : index
    %56 = vector.load %arg3[%c0_38, %c0_39] : memref<120x256xbf16, #tpu.memory_space<vmem>>, vector<120x256xbf16>
    %57 = arith.truncf %55 : vector<6x120xf32> to vector<6x120xbf16>
    %58 = arith.extf %57 : vector<6x120xbf16> to vector<6x120xf32>
    %59 = arith.subf %55, %58 : vector<6x120xf32>
    %60 = arith.truncf %59 : vector<6x120xf32> to vector<6x120xbf16>
    %61 = arith.extf %60 : vector<6x120xbf16> to vector<6x120xf32>
    %62 = arith.subf %59, %61 : vector<6x120xf32>
    %63 = arith.truncf %62 : vector<6x120xf32> to vector<6x120xbf16>
    %cst_40 = arith.constant dense<0.000000e+00> : vector<6x256xf32>
    %64 = tpu.matmul %63, %56, %cst_40 {dimension_numbers = #tpu.dot_dimension_numbers<[1], [0], [0], [1], [0, 0, 1, 1], [], []>} : vector<6x120xbf16>, vector<120x256xbf16>, vector<6x256xf32> -> vector<6x256xf32>
    %cst_41 = arith.constant dense<0.000000e+00> : vector<6x256xf32>
    %65 = tpu.matmul %60, %56, %cst_41 {dimension_numbers = #tpu.dot_dimension_numbers<[1], [0], [0], [1], [0, 0, 1, 1], [], []>} : vector<6x120xbf16>, vector<120x256xbf16>, vector<6x256xf32> -> vector<6x256xf32>
    %66 = arith.addf %64, %65 : vector<6x256xf32>
    %cst_42 = arith.constant dense<0.000000e+00> : vector<6x256xf32>
    %67 = tpu.matmul %57, %56, %cst_42 {dimension_numbers = #tpu.dot_dimension_numbers<[1], [0], [0], [1], [0, 0, 1, 1], [], []>} : vector<6x120xbf16>, vector<120x256xbf16>, vector<6x256xf32> -> vector<6x256xf32>
    %68 = arith.addf %66, %67 : vector<6x256xf32>
    %c0_43 = arith.constant 0 : index
    %c3_44 = arith.constant 3 : index
    %c0_45 = arith.constant 0 : index
    %c0_46 = arith.constant 0 : index
    %69 = vector.load %arg5[%c0_43, %c3_44, %c0_45, %c0_46] : memref<1x4x8x256xf32, #tpu.memory_space<vmem>>, vector<1x1x6x256xf32>
    %70 = vector.shape_cast %69 : vector<1x1x6x256xf32> to vector<6x256xf32>
    %71 = vector.shape_cast %68 : vector<6x256xf32> to vector<1x1x6x256xf32>
    tpu.vector_store %arg5[%c0_43, %c3_44, %c0_45, %c0_46], %71 {strides = array<i32>} : memref<1x4x8x256xf32, #tpu.memory_space<vmem>>, vector<1x1x6x256xf32>,
    %cst_47 = arith.constant 0.000000e+00 : f32
    %72 = vector.broadcast %cst_47 : f32 to vector<4x2x256xf32>
    %c0_48 = arith.constant 0 : index
    %c0_49 = arith.constant 0 : index
    %c6 = arith.constant 6 : index
    %c0_50 = arith.constant 0 : index
    %73 = vector.load %arg5[%c0_48, %c0_49, %c6, %c0_50] : memref<1x4x8x256xf32, #tpu.memory_space<vmem>>, vector<1x4x2x256xf32>
    %74 = vector.shape_cast %73 : vector<1x4x2x256xf32> to vector<4x2x256xf32>
    %75 = vector.shape_cast %72 : vector<4x2x256xf32> to vector<1x4x2x256xf32>
    tpu.vector_store %arg5[%c0_48, %c0_49, %c6, %c0_50], %75 {strides = array<i32>} : memref<1x4x8x256xf32, #tpu.memory_space<vmem>>, vector<1x4x2x256xf32>,
    return
  }
  func.func @transform_0(%arg0: i32, %arg1: i32, %arg2: i32) -> (i32, i32) {
    %c0_i32 = arith.constant 0 : i32
    %c0_i32_0 = arith.constant 0 : i32
    %c0_i32_1 = arith.constant 0 : i32
    return %c0_i32, %c0_i32_0 : i32, i32
  }
  func.func @transform_1(%arg0: i32, %arg1: i32, %arg2: i32) -> (i32, i32, i32, i32) {
    %c0_i32 = arith.constant 0 : i32
    %c0_i32_0 = arith.constant 0 : i32
    %c0_i32_1 = arith.constant 0 : i32
    return %arg0, %arg1, %c0_i32, %c0_i32_0 : i32, i32, i32, i32
  }
  func.func @transform_2(%arg0: i32, %arg1: i32, %arg2: i32) -> (i32, i32, i32, i32) {
    %c0_i32 = arith.constant 0 : i32
    %c0_i32_0 = arith.constant 0 : i32
    return %arg0, %arg1, %arg2, %c0_i32 : i32, i32, i32, i32
  }
}

</mosaic_0001>

<bundles_post_ra>
// kernel: consistent_output_shape_3d.1
= control target key start
LH: loop header
LB: loop body
LE: loop exit
PB: predicated region body
PF: predicated region fallthrough
CT: control target
= control target key end

     0   :  { %s1501_s9 = smov 0   ;;  %s1503_s10 = smov 0   ;;  %s2187_s0 = inlined_call_operand.vmem [shape: bf16[120,256], index: 0, kind: input, shape index: {}]   ;;  %s2188_s1 = inlined_call_operand.vmem [shape: f32[2,4,6,120], index: 1, kind: input, shape index: {}]   ;;  %s2189_s2 = inlined_call_operand.vmem [shape: f32[2,4,8,256], index: 2, kind: output, shape index: {}]  }
   0x1   :  { %s1505_s11 = smov 0  }
   0x2 LB: > { %s31_s12 = sadd.s32 1, %s1479_s10  ;;  %p1114_p0 = scmp.ge.s32.totalorder %s1483_s11, 1  ;;  %s1483_s11 = sphi %s1505_s11, %s12_s11   ;;  %s1479_s10 = sphi %s1503_s10, %s2191_s10   ;;  %s1475_s9 = sphi %s1501_s9, %s2190_s9  }
   0x3   : > { %p33_p1 = scmp.ge.s32.totalorder %s31_s12, 2  ;;  %p142_p2 = scmp.lt.s32.totalorder %s1483_s11, 3 }
   0x5   : > { %s2193_s12 = smov (%p33_p1, %s31_s12), 0  ;;  %p143_p3 = pnand %p1114_p0, %p142_p2 }
   0x6   : > { %p178_p4 = scmp.lt.s32.totalorder (!%p143_p3), %s1475_s9, 1 }
   0x7   : > { %146 = sbr.rel (%p143_p3) target bundleno = 350 (0x15e), region = 28 }
   0xc   : > { %v217_v0 = vld [vmem:[%s2187_s0 + $0x70] sm:$0xff]  ;;  %vm304_vm0 = vcmask 1043456   ;;  %v1169_v3 = vld [vmem:[%s2187_s0 + $0x60] sm:$0xf]  ;;  %v1393_v6 = vld [vmem:[%s2187_s0 + $0x64] sm:$0xf0] }
   0xd   : > { %v268_v1 = vunpack.c.l.b16 %v217_v0  ;;  %v269_v2 = vunpack.c.h.b16 %v217_v0  ;;  %v1392_v7 = vld [vmem:[%s2187_s0 + $0x64] sm:$0xf]  ;;  %v1171_v8 = vld [vmem:[%s2187_s0 + $0x68] sm:$0xf0]  ;;  %v1542_v11 = vor.u32 %v1393_v6, %v1169_v3  ;;  %v1161_v13 = vld [vmem:[%s2187_s0 + $0x50] sm:$0xf] }
   0xe   : > { %v1544_v12 = vor.u32 %v1392_v7, %v1171_v8  ;;  %v1391_v14 = vld [vmem:[%s2187_s0 + $0x54] sm:$0xf0]  ;;  %v1390_v15 = vld [vmem:[%s2187_s0 + $0x54] sm:$0xf]  ;;  %v1163_v16 = vld [vmem:[%s2187_s0 + $0x58] sm:$0xf0] }
   0xf   : > { %v284_v4 = vpack.c.b16 %v268_v1, %v268_v1  ;;  %v285_v5 = vpack.c.b16 %v269_v2, %v269_v2  ;;  %v1562_v17 = vor.u32 %v1391_v14, %v1161_v13  ;;  %v1564_v18 = vor.u32 %v1390_v15, %v1163_v16  ;;  %v1153_v19 = vld [vmem:[%s2187_s0 + $0x40] sm:$0xf]  ;;  %v1389_v20 = vld [vmem:[%s2187_s0 + $0x44] sm:$0xf0]  ;;  %v1388_v21 = vld [vmem:[%s2187_s0 + $0x44] sm:$0xf] }
  0x10   : > { %v1155_v22 = vld [vmem:[%s2187_s0 + $0x48] sm:$0xf0]  ;;  %v1583_v23 = vor.u32 %v1389_v20, %v1153_v19  ;;  %v1145_v25 = vld [vmem:[%s2187_s0 + $0x30] sm:$0xf]  ;;  %v1387_v26 = vld [vmem:[%s2187_s0 + $0x34] sm:$0xf0] }
  0x11   : > { %v1536_v9 = vsel %vm304_vm0, %v284_v4, 0  ;;  %v1538_v10 = vsel %vm304_vm0, %v285_v5, 0  ;;  %v1585_v24 = vor.u32 %v1388_v21, %v1155_v22  ;;  %v1386_v27 = vld [vmem:[%s2187_s0 + $0x34] sm:$0xf]  ;;  %v1147_v28 = vld [vmem:[%s2187_s0 + $0x38] sm:$0xf0]  ;;  %v1607_v29 = vor.u32 %v1387_v26, %v1145_v25 }
  0x12   : > { %311 = vmatpush.bf16.msra.mxu0 %v1536_v9  ;;  %324 = vmatpush.bf16.msra.mxu1 %v1538_v10  ;;  %s2195_s9 = smov (!%p178_p4, %s1475_s9), 1  ;;  %v1609_v30 = vor.u32 %v1386_v27, %v1147_v28  ;;  %v1137_v31 = vld [vmem:[%s2187_s0 + $0x20] sm:$0xf]  ;;  %v1385_v32 = vld [vmem:[%s2187_s0 + $0x24] sm:$0xf0]  ;;  %v1485_v50 = vmov 0.0  }
  0x13   : > { %340 = vmatpush.bf16.msra.mxu2 %v1536_v9  ;;  %353 = vmatpush.bf16.msra.mxu3 %v1538_v10  ;;  %s1378_s23 = sshll.u32 %s2195_s9, 5  ;;  %v1384_v33 = vld [vmem:[%s2187_s0 + $0x24] sm:$0xf]  ;;  %v1139_v34 = vld [vmem:[%s2187_s0 + $0x28] sm:$0xf0]  ;;  %v1635_v37 = vor.u32 %v1385_v32, %v1137_v31  ;;  %s1379_s13 = sshll.u32 %s2195_s9, 6 }
  0x14   : > { %s1620_s30 = scalar_lea.vmem %s2188_s1, %s1378_s23  ;;  %v1637_v38 = vor.u32 %v1384_v33, %v1139_v34  ;;  %v1129_v39 = vld [vmem:[%s2187_s0 + $0x10] sm:$0xf]  ;;  %v1383_v41 = vld [vmem:[%s2187_s0 + $0x14] sm:$0xf0]  ;;  %v1382_v42 = vld [vmem:[%s2187_s0 + $0x14] sm:$0xf]  ;;  %s1658_s21 = scalar_lea.vmem %s2189_s2, %s1379_s13 }
  0x15   : > { %v202_v35 = vld [vmem:[%s1620_s30] sm:$0x3f]  ;;  %v1131_v43 = vld [vmem:[%s2187_s0 + $0x18] sm:$0xf0]  ;;  %v1662_v45 = vor.u32 %v1383_v41, %v1129_v39  ;;  %v1381_v48 = vld [vmem:[%s2187_s0 + $0x4] sm:$0xf0] }
  0x16   : > { %312 = vmatpush.bf16.msra.mxu0 %v1542_v11  ;;  %325 = vmatpush.bf16.msra.mxu1 %v1544_v12  ;;  %v1631_v36 = vpack.c.bf16 %v202_v35, %v202_v35  ;;  %v1664_v46 = vor.u32 %v1382_v42, %v1131_v43  ;;  %v1121_v47 = vld [vmem:[%s2187_s0] sm:$0xf]  ;;  %990 = vst [vmem:[%s1658_s21] sm:$0xc0] %v1485_v50  ;;  %v1380_v51 = vld [vmem:[%s2187_s0 + $0x4] sm:$0xf]  ;;  %vm300_vm1 = vcmask 982016  }
  0x17   : > { %341 = vmatpush.bf16.msra.mxu2 %v1542_v11  ;;  %354 = vmatpush.bf16.msra.mxu3 %v1544_v12  ;;  %v1123_v52 = vld [vmem:[%s2187_s0 + $0x8] sm:$0xf0]  ;;  %991 = vst [vmem:[%s1658_s21 + $0x8] sm:$0xc0] %v1485_v50  ;;  %v1686_v54 = vor.u32 %v1381_v48, %v1121_v47  ;;  %v1232_v57 = vld [vmem:[%s2187_s0 + $0x60] sm:$0xf] }
  0x18   : > { %v219_v40 = vunpack.c.l.bf16 %v1631_v36  ;;  %992 = vst [vmem:[%s1658_s21 + $0x10] sm:$0xc0] %v1485_v50  ;;  %v1688_v55 = vor.u32 %v1380_v51, %v1123_v52  ;;  %v1407_v58 = vld [vmem:[%s2187_s0 + $0x64] sm:$0xf0]  ;;  %v1406_v59 = vld [vmem:[%s2187_s0 + $0x64] sm:$0xf] }
  0x19   : > { %993 = vst [vmem:[%s1658_s21 + $0x18] sm:$0xc0] %v1485_v50  ;;  %v1234_v60 = vld [vmem:[%s2187_s0 + $0x68] sm:$0xf0]  ;;  %v1716_v62 = vor.u32 %v1407_v58, %v1232_v57  ;;  %v1224_v0 = vld [vmem:[%s2187_s0 + $0x50] sm:$0xf] }
  0x1a   : > { %313 = vmatpush.bf16.msra.mxu0 %v1562_v17  ;;  %326 = vmatpush.bf16.msra.mxu1 %v1564_v18  ;;  %v220_v44 = vsub.f32 %v202_v35, %v219_v40  ;;  %994 = vst [vmem:[%s1658_s21 + $0x20] sm:$0xc0] %v1485_v50  ;;  %v1718_v63 = vor.u32 %v1406_v59, %v1234_v60  ;;  %v1405_v1 = vld [vmem:[%s2187_s0 + $0x54] sm:$0xf0]  ;;  %v1404_v2 = vld [vmem:[%s2187_s0 + $0x54] sm:$0xf] }
  0x1b   : > { %342 = vmatpush.bf16.msra.mxu2 %v1562_v17  ;;  %355 = vmatpush.bf16.msra.mxu3 %v1564_v18  ;;  %995 = vst [vmem:[%s1658_s21 + $0x28] sm:$0xc0] %v1485_v50  ;;  %v1226_v3 = vld [vmem:[%s2187_s0 + $0x58] sm:$0xf0]  ;;  %v1740_v4 = vor.u32 %v1405_v1, %v1224_v0  ;;  %v1216_v6 = vld [vmem:[%s2187_s0 + $0x40] sm:$0xf] }
  0x1c   : > { %v221_v49 = vpack.c.bf16 %v220_v44, %v220_v44  ;;  %996 = vst [vmem:[%s1658_s21 + $0x30] sm:$0xc0] %v1485_v50  ;;  %v1742_v5 = vor.u32 %v1404_v2, %v1226_v3  ;;  %v1403_v7 = vld [vmem:[%s2187_s0 + $0x44] sm:$0xf0]  ;;  %v1402_v8 = vld [vmem:[%s2187_s0 + $0x44] sm:$0xf] }
  0x1d   : > { %997 = vst [vmem:[%s1658_s21 + $0x38] sm:$0xc0] %v1485_v50  ;;  %v1208_v14 = vld [vmem:[%s2187_s0 + $0x30] sm:$0xf]  ;;  %v1401_v15 = vld [vmem:[%s2187_s0 + $0x34] sm:$0xf0] }
  0x1e   : > { %314 = vmatpush.bf16.msra.mxu0 %v1583_v23  ;;  %327 = vmatpush.bf16.msra.mxu1 %v1585_v24  ;;  %v222_v53 = vunpack.c.l.bf16 %v221_v49  ;;  %v1400_v16 = vld [vmem:[%s2187_s0 + $0x34] sm:$0xf]  ;;  %v1200_v20 = vld [vmem:[%s2187_s0 + $0x20] sm:$0xf]  ;;  %v1399_v21 = vld [vmem:[%s2187_s0 + $0x24] sm:$0xf0] }
  0x1f   : > { %343 = vmatpush.bf16.msra.mxu2 %v1583_v23  ;;  %356 = vmatpush.bf16.msra.mxu3 %v1585_v24  ;;  %v1398_v22 = vld [vmem:[%s2187_s0 + $0x24] sm:$0xf]  ;;  %v1201_v25 = vor.u32 %v1399_v21, %v1200_v20  ;;  %v1192_v27 = vld [vmem:[%s2187_s0 + $0x10] sm:$0xf]  ;;  %v1397_v31 = vld [vmem:[%s2187_s0 + $0x14] sm:$0xf0] }
  0x20   : > { %v223_v56 = vsub.f32 %v220_v44, %v222_v53  ;;  %v1193_v32 = vor.u32 %v1397_v31, %v1192_v27  ;;  %v1184_v34 = vld [vmem:[%s2187_s0] sm:$0xf]  ;;  %v1395_v39 = vld [vmem:[%s2187_s0 + $0x4] sm:$0xf0]  ;;  %v1420_v47 = vld [vmem:[%s2187_s0 + $0x64] sm:$0xf] }
  0x21   : > { %v1185_v40 = vor.u32 %v1395_v39, %v1184_v34  ;;  %v1299_v48 = vld [vmem:[%s2187_s0 + $0x68] sm:$0xf0]  ;;  %v1289_v52 = vld [vmem:[%s2187_s0 + $0x50] sm:$0xf]  ;;  %v1419_v53 = vld [vmem:[%s2187_s0 + $0x54] sm:$0xf0] }
  0x22   : > { %315 = vmatpush.bf16.msra.mxu0 %v1607_v29  ;;  %328 = vmatpush.bf16.msra.mxu1 %v1609_v30  ;;  %v224_v61 = vpack.c.bf16 %v223_v56, %v223_v56  ;;  %v1866_v51 = vor.u32 %v1420_v47, %v1299_v48  ;;  %v1890_v56 = vor.u32 %v1419_v53, %v1289_v52  ;;  %v1281_v58 = vld [vmem:[%s2187_s0 + $0x40] sm:$0xf]  ;;  %v1417_v59 = vld [vmem:[%s2187_s0 + $0x44] sm:$0xf0]  ;;  %v1416_v60 = vld [vmem:[%s2187_s0 + $0x44] sm:$0xf] }
  0x23   : > { %344 = vmatpush.bf16.msra.mxu2 %v1607_v29  ;;  %357 = vmatpush.bf16.msra.mxu3 %v1609_v30  ;;  %v1913_v0 = vor.u32 %v1417_v59, %v1281_v58  ;;  %v1273_v2 = vld [vmem:[%s2187_s0 + $0x30] sm:$0xf]  ;;  %v1415_v3 = vld [vmem:[%s2187_s0 + $0x34] sm:$0xf0]  ;;  %v1410_v20 = vld [vmem:[%s2187_s0 + $0x14] sm:$0xf] }
  0x24   : > { %v1259_v21 = vld [vmem:[%s2187_s0 + $0x18] sm:$0xf0]  ;;  %v1408_v27 = vld [vmem:[%s2187_s0 + $0x4] sm:$0xf]  ;;  %v1435_v34 = vld [vmem:[%s2187_s0 + $0x64] sm:$0xf0] }
  0x25   : > { %v1364_v39 = vld [vmem:[%s2187_s0 + $0x68] sm:$0xf0]  ;;  %v1431_v47 = vld [vmem:[%s2187_s0 + $0x44] sm:$0xf0]  ;;  %v1430_v48 = vld [vmem:[%s2187_s0 + $0x44] sm:$0xf] }
  0x26   : > { %316 = vmatpush.bf16.msra.mxu0 %v1635_v37  ;;  %329 = vmatpush.bf16.msra.mxu1 %v1637_v38  ;;  %v1338_v52 = vld [vmem:[%s2187_s0 + $0x30] sm:$0xf]  ;;  %v1429_v53 = vld [vmem:[%s2187_s0 + $0x34] sm:$0xf0]  ;;  %v1330_v58 = vld [vmem:[%s2187_s0 + $0x20] sm:$0xf] }
  0x27   : > { %345 = vmatpush.bf16.msra.mxu2 %v1635_v37  ;;  %358 = vmatpush.bf16.msra.mxu3 %v1637_v38  ;;  %v1427_v59 = vld [vmem:[%s2187_s0 + $0x24] sm:$0xf0] }
  0x2a   : > { %317 = vmatpush.bf16.msra.mxu0 %v1662_v45  ;;  %330 = vmatpush.bf16.msra.mxu1 %v1664_v46 }
  0x2b   : > { %346 = vmatpush.bf16.msra.mxu2 %v1662_v45  ;;  %359 = vmatpush.bf16.msra.mxu3 %v1664_v46 }
  0x2e   : > { %318 = vmatpush.bf16.msra.mxu0 %v1686_v54  ;;  %331 = vmatpush.bf16.msra.mxu1 %v1688_v55 }
  0x2f   : > { %347 = vmatpush.bf16.msra.mxu2 %v1686_v54  ;;  %360 = vmatpush.bf16.msra.mxu3 %v1688_v55 }
  0x31   : > { %1175 = vmatmul.msk.bf16.vlgmr.msra.gmra.mxu0 %vm300_vm1, %v221_v49  ;;  %1176 = vmatmul.msk.bf16.vlgmr.msra.gmra.mxu1 %vm300_vm1, %v221_v49 }
  0x32   : > { %369 = vmatpush.bf16.msrb.mxu0 %v1536_v9  ;;  %382 = vmatpush.bf16.msrb.mxu1 %v1538_v10 }
  0x33   : > { %507 = vmatpush.bf16.msrb.mxu2 %v1536_v9  ;;  %520 = vmatpush.bf16.msrb.mxu3 %v1538_v10 }
  0x34   : > { %1177 = vmatmul.msk.bf16.vlgmr.msra.gmra.mxu2 %vm300_vm1, %v224_v61  ;;  %1178 = vmatmul.msk.bf16.vlgmr.msra.gmra.mxu3 %vm300_vm1, %v224_v61  ;;  %v1283_v61 = vld [vmem:[%s2187_s0 + $0x48] sm:$0xf0] }
  0x35   : > { %v1915_v1 = vor.u32 %v1416_v60, %v1283_v61  ;;  %v1426_v60 = vld [vmem:[%s2187_s0 + $0x24] sm:$0xf]  ;;  %v1332_v61 = vld [vmem:[%s2187_s0 + $0x28] sm:$0xf0] }
  0x36   : > { %370 = vmatpush.bf16.msrb.mxu0 %v1542_v11  ;;  %383 = vmatpush.bf16.msrb.mxu1 %v1544_v12  ;;  %v1218_v11 = vld [vmem:[%s2187_s0 + $0x48] sm:$0xf0]  ;;  %v1760_v12 = vor.u32 %v1403_v7, %v1216_v6  ;;  %v1934_v7 = vor.u32 %v1415_v3, %v1273_v2  ;;  %v1322_v2 = vld [vmem:[%s2187_s0 + $0x10] sm:$0xf] }
  0x37   : > { %508 = vmatpush.bf16.msrb.mxu2 %v1716_v62  ;;  %521 = vmatpush.bf16.msrb.mxu3 %v1718_v63  ;;  %v1762_v13 = vor.u32 %v1402_v8, %v1218_v11  ;;  %v1265_v11 = vld [vmem:[%s2187_s0 + $0x20] sm:$0xf] }
  0x3a   : > { %371 = vmatpush.bf16.msrb.mxu0 %v1562_v17  ;;  %384 = vmatpush.bf16.msrb.mxu1 %v1564_v18  ;;  %v1210_v17 = vld [vmem:[%s2187_s0 + $0x38] sm:$0xf0]  ;;  %v1209_v18 = vor.u32 %v1401_v15, %v1208_v14  ;;  %v1267_v14 = vld [vmem:[%s2187_s0 + $0x28] sm:$0xf0] }
  0x3b   : > { %509 = vmatpush.bf16.msrb.mxu2 %v1740_v4  ;;  %522 = vmatpush.bf16.msrb.mxu3 %v1742_v5  ;;  %v1213_v19 = vor.u32 %v1400_v16, %v1210_v17 }
  0x3e   : > { %372 = vmatpush.bf16.msrb.mxu0 %v1583_v23  ;;  %385 = vmatpush.bf16.msrb.mxu1 %v1585_v24  ;;  %v1202_v23 = vld [vmem:[%s2187_s0 + $0x28] sm:$0xf0] }
  0x3f   : > { %510 = vmatpush.bf16.msrb.mxu2 %v1760_v12  ;;  %523 = vmatpush.bf16.msrb.mxu3 %v1762_v13  ;;  %v1181_v24 = vld [vmem:[%s1620_s30 + $0x8] sm:$0x3f]  ;;  %v1205_v26 = vor.u32 %v1398_v22, %v1202_v23 }
  0x40   : > { %v1798_v28 = vpack.c.bf16 %v1181_v24, %v1181_v24 }
  0x42   : > { %373 = vmatpush.bf16.msrb.mxu0 %v1607_v29  ;;  %386 = vmatpush.bf16.msrb.mxu1 %v1609_v30  ;;  %v1396_v29 = vld [vmem:[%s2187_s0 + $0x14] sm:$0xf]  ;;  %v1194_v30 = vld [vmem:[%s2187_s0 + $0x18] sm:$0xf0]  ;;  %v417_v35 = vunpack.c.l.bf16 %v1798_v28 }
  0x43   : > { %511 = vmatpush.bf16.msrb.mxu2 %v1209_v18  ;;  %524 = vmatpush.bf16.msrb.mxu3 %v1213_v19  ;;  %v1197_v33 = vor.u32 %v1396_v29, %v1194_v30 }
  0x44   : > { %v418_v42 = vsub.f32 %v1181_v24, %v417_v35  ;;  %v1976_v24 = vor.u32 %v1410_v20, %v1259_v21  ;;  %v1434_v35 = vld [vmem:[%s2187_s0 + $0x64] sm:$0xf] }
  0x46   : > { %374 = vmatpush.bf16.msrb.mxu0 %v1635_v37  ;;  %387 = vmatpush.bf16.msrb.mxu1 %v1637_v38  ;;  %v1394_v37 = vld [vmem:[%s2187_s0 + $0x4] sm:$0xf]  ;;  %v1186_v38 = vld [vmem:[%s2187_s0 + $0x8] sm:$0xf0]  ;;  %v419_v43 = vpack.c.bf16 %v418_v42, %v418_v42 }
  0x47   : > { %512 = vmatpush.bf16.msrb.mxu2 %v1201_v25  ;;  %525 = vmatpush.bf16.msrb.mxu3 %v1205_v26  ;;  %v1189_v41 = vor.u32 %v1394_v37, %v1186_v38 }
  0x4a   : > { %375 = vmatpush.bf16.msrb.mxu0 %v1662_v45  ;;  %388 = vmatpush.bf16.msrb.mxu1 %v1664_v46  ;;  %v1297_v45 = vld [vmem:[%s2187_s0 + $0x60] sm:$0xf]  ;;  %v1421_v46 = vld [vmem:[%s2187_s0 + $0x64] sm:$0xf0] }
  0x4b   : > { %513 = vmatpush.bf16.msrb.mxu2 %v1193_v32  ;;  %526 = vmatpush.bf16.msrb.mxu3 %v1197_v33  ;;  %v1864_v50 = vor.u32 %v1421_v46, %v1297_v45  ;;  %v1346_v46 = vld [vmem:[%s2187_s0 + $0x40] sm:$0xf] }
  0x4e   : > { %376 = vmatpush.bf16.msrb.mxu0 %v1686_v54  ;;  %389 = vmatpush.bf16.msrb.mxu1 %v1688_v55  ;;  %v1418_v54 = vld [vmem:[%s2187_s0 + $0x54] sm:$0xf]  ;;  %v1291_v55 = vld [vmem:[%s2187_s0 + $0x58] sm:$0xf0] }
  0x4f   : > { %514 = vmatpush.bf16.msrb.mxu2 %v1185_v40  ;;  %527 = vmatpush.bf16.msrb.mxu3 %v1189_v41  ;;  %v1892_v57 = vor.u32 %v1418_v54, %v1291_v55  ;;  %v1428_v54 = vld [vmem:[%s2187_s0 + $0x34] sm:$0xf]  ;;  %v1340_v55 = vld [vmem:[%s2187_s0 + $0x38] sm:$0xf0] }
  0x51   : > { %1179 = vmatmul.msk.bf16.vlgmr.msrb.gmra.mxu0 %vm300_vm1, %v1631_v36  ;;  %1180 = vmatmul.msk.bf16.vlgmr.msrb.gmra.mxu1 %vm300_vm1, %v1631_v36  ;;  %v420_v36 = vunpack.c.l.bf16 %v419_v43 }
  0x52   : > { %536 = vmatpush.bf16.msra.mxu0 %v1536_v9  ;;  %549 = vmatpush.bf16.msra.mxu1 %v1538_v10 }
  0x53   : > { %565 = vmatpush.bf16.msra.mxu2 %v1536_v9  ;;  %578 = vmatpush.bf16.msra.mxu3 %v1538_v10  ;;  %v421_v44 = vsub.f32 %v418_v42, %v420_v36  ;;  %v1433_v42 = vld [vmem:[%s2187_s0 + $0x54] sm:$0xf0]  ;;  %v1356_v36 = vld [vmem:[%s2187_s0 + $0x58] sm:$0xf0] }
  0x54   : > { %1238 = vmatmul.msk.bf16.vlgmr.msrb.gmra.mxu2 %vm300_vm1, %v419_v43  ;;  %1239 = vmatmul.msk.bf16.vlgmr.msrb.gmra.mxu3 %vm300_vm1, %v419_v43  ;;  %v1432_v43 = vld [vmem:[%s2187_s0 + $0x54] sm:$0xf] }
  0x55   : > { %v422_v49 = vpack.c.bf16 %v421_v44, %v421_v44  ;;  %v2046_v45 = vor.u32 %v1432_v43, %v1356_v36 }
  0x56   : > { %537 = vmatpush.bf16.msra.mxu0 %v1716_v62  ;;  %550 = vmatpush.bf16.msra.mxu1 %v1718_v63 }
  0x57   : > { %566 = vmatpush.bf16.msra.mxu2 %v1716_v62  ;;  %579 = vmatpush.bf16.msra.mxu3 %v1718_v63  ;;  %v1246_v62 = vld [vmem:[%s1620_s30 + $0x10] sm:$0x3f] }
  0x58   : > { %v1909_v63 = vpack.c.bf16 %v1246_v62, %v1246_v62 }
  0x5a   : > { %538 = vmatpush.bf16.msra.mxu0 %v1740_v4  ;;  %551 = vmatpush.bf16.msra.mxu1 %v1742_v5  ;;  %v614_v6 = vunpack.c.l.bf16 %v1909_v63 }
  0x5b   : > { %567 = vmatpush.bf16.msra.mxu2 %v1740_v4  ;;  %580 = vmatpush.bf16.msra.mxu3 %v1742_v5  ;;  %v1414_v4 = vld [vmem:[%s2187_s0 + $0x34] sm:$0xf]  ;;  %v1275_v5 = vld [vmem:[%s2187_s0 + $0x38] sm:$0xf0] }
  0x5c   : > { %v1936_v8 = vor.u32 %v1414_v4, %v1275_v5  ;;  %v615_v15 = vsub.f32 %v1246_v62, %v614_v6  ;;  %v1311_v62 = vld [vmem:[%s1620_s30 + $0x18] sm:$0x3f]  ;;  %v1424_v5 = vld [vmem:[%s2187_s0 + $0x14] sm:$0xf] }
  0x5d   : > { %v2108_v3 = vpack.c.bf16 %v1311_v62, %v1311_v62  ;;  %v1425_v4 = vld [vmem:[%s2187_s0 + $0x14] sm:$0xf0]  ;;  %v1324_v6 = vld [vmem:[%s2187_s0 + $0x18] sm:$0xf0] }
  0x5e   : > { %539 = vmatpush.bf16.msra.mxu0 %v1760_v12  ;;  %552 = vmatpush.bf16.msra.mxu1 %v1762_v13  ;;  %v616_v22 = vpack.c.bf16 %v615_v15, %v615_v15 }
  0x5f   : > { %568 = vmatpush.bf16.msra.mxu2 %v1760_v12  ;;  %581 = vmatpush.bf16.msra.mxu3 %v1762_v13  ;;  %v1413_v12 = vld [vmem:[%s2187_s0 + $0x24] sm:$0xf0]  ;;  %v1412_v13 = vld [vmem:[%s2187_s0 + $0x24] sm:$0xf] }
  0x60   : > { %v1954_v16 = vor.u32 %v1413_v12, %v1265_v11  ;;  %v1956_v17 = vor.u32 %v1412_v13, %v1267_v14  ;;  %v617_v31 = vunpack.c.l.bf16 %v616_v22  ;;  %v1314_v11 = vld [vmem:[%s2187_s0] sm:$0xf]  ;;  %v811_v12 = vunpack.c.l.bf16 %v2108_v3  ;;  %v1423_v13 = vld [vmem:[%s2187_s0 + $0x4] sm:$0xf0]  ;;  %v1422_v14 = vld [vmem:[%s2187_s0 + $0x4] sm:$0xf] }
  0x62   : > { %540 = vmatpush.bf16.msra.mxu0 %v1209_v18  ;;  %553 = vmatpush.bf16.msra.mxu1 %v1213_v19 }
  0x63   : > { %569 = vmatpush.bf16.msra.mxu2 %v1209_v18  ;;  %582 = vmatpush.bf16.msra.mxu3 %v1213_v19  ;;  %v1257_v18 = vld [vmem:[%s2187_s0 + $0x10] sm:$0xf]  ;;  %v1411_v19 = vld [vmem:[%s2187_s0 + $0x14] sm:$0xf0] }
  0x64   : > { %v1974_v23 = vor.u32 %v1411_v19, %v1257_v18  ;;  %v812_v18 = vsub.f32 %v1311_v62, %v811_v12 }
  0x66   : > { %541 = vmatpush.bf16.msra.mxu0 %v1201_v25  ;;  %554 = vmatpush.bf16.msra.mxu1 %v1205_v26  ;;  %v813_v19 = vpack.c.bf16 %v812_v18, %v812_v18 }
  0x67   : > { %570 = vmatpush.bf16.msra.mxu2 %v1201_v25  ;;  %583 = vmatpush.bf16.msra.mxu3 %v1205_v26  ;;  %v1249_v25 = vld [vmem:[%s2187_s0] sm:$0xf]  ;;  %v1409_v26 = vld [vmem:[%s2187_s0 + $0x4] sm:$0xf0] }
  0x68   : > { %v1994_v29 = vor.u32 %v1409_v26, %v1249_v25 }
  0x6a   : > { %542 = vmatpush.bf16.msra.mxu0 %v1193_v32  ;;  %555 = vmatpush.bf16.msra.mxu1 %v1197_v33 }
  0x6b   : > { %571 = vmatpush.bf16.msra.mxu2 %v1193_v32  ;;  %584 = vmatpush.bf16.msra.mxu3 %v1197_v33  ;;  %v618_v32 = vsub.f32 %v615_v15, %v617_v31  ;;  %v1362_v33 = vld [vmem:[%s2187_s0 + $0x60] sm:$0xf]  ;;  %v1316_v15 = vld [vmem:[%s2187_s0 + $0x8] sm:$0xf0] }
  0x6c   : > { %v2020_v38 = vor.u32 %v1435_v34, %v1362_v33 }
  0x6d   : > { %v619_v37 = vpack.c.bf16 %v618_v32, %v618_v32 }
  0x6e   : > { %543 = vmatpush.bf16.msra.mxu0 %v1185_v40  ;;  %556 = vmatpush.bf16.msra.mxu1 %v1189_v41 }
  0x6f   : > { %572 = vmatpush.bf16.msra.mxu2 %v1185_v40  ;;  %585 = vmatpush.bf16.msra.mxu3 %v1189_v41  ;;  %v2022_v40 = vor.u32 %v1434_v35, %v1364_v39  ;;  %v1354_v41 = vld [vmem:[%s2187_s0 + $0x50] sm:$0xf] }
  0x70   : > { %v2044_v44 = vor.u32 %v1433_v42, %v1354_v41 }
  0x71   : > { %1240 = vmatmul.msk.bf16.vlgmr.msra.gmra.mxu0 %vm300_vm1, %v422_v49  ;;  %1241 = vmatmul.msk.bf16.vlgmr.msra.gmra.mxu1 %vm300_vm1, %v422_v49  ;;  %v1348_v49 = vld [vmem:[%s2187_s0 + $0x48] sm:$0xf0] }
  0x72   : > { %704 = vmatpush.bf16.msrb.mxu0 %v1536_v9  ;;  %717 = vmatpush.bf16.msrb.mxu1 %v1538_v10 }
  0x73   : > { %733 = vmatpush.bf16.msrb.mxu2 %v1536_v9  ;;  %746 = vmatpush.bf16.msrb.mxu3 %v1538_v10 }
  0x74   : > { %1242 = vmatmul.msk.bf16.vlgmr.msra.gmra.mxu2 %vm300_vm1, %v1798_v28  ;;  %1243 = vmatmul.msk.bf16.vlgmr.msra.gmra.mxu3 %vm300_vm1, %v1798_v28  ;;  %v1251_v28 = vld [vmem:[%s2187_s0 + $0x8] sm:$0xf0] }
  0x75   : > { %v1996_v30 = vor.u32 %v1408_v27, %v1251_v28 }
  0x76   : > { %705 = vmatpush.bf16.msrb.mxu0 %v1864_v50  ;;  %718 = vmatpush.bf16.msrb.mxu1 %v1866_v51 }
  0x77   : > { %734 = vmatpush.bf16.msrb.mxu2 %v1864_v50  ;;  %747 = vmatpush.bf16.msrb.mxu3 %v1866_v51 }
  0x7a   : > { %706 = vmatpush.bf16.msrb.mxu0 %v1890_v56  ;;  %719 = vmatpush.bf16.msrb.mxu1 %v1892_v57 }
  0x7b   : > { %735 = vmatpush.bf16.msrb.mxu2 %v1890_v56  ;;  %748 = vmatpush.bf16.msrb.mxu3 %v1892_v57 }
  0x7e   : > { %707 = vmatpush.bf16.msrb.mxu0 %v1913_v0  ;;  %720 = vmatpush.bf16.msrb.mxu1 %v1915_v1 }
  0x7f   : > { %736 = vmatpush.bf16.msrb.mxu2 %v1913_v0  ;;  %749 = vmatpush.bf16.msrb.mxu3 %v1915_v1 }
  0x82   : > { %708 = vmatpush.bf16.msrb.mxu0 %v1934_v7  ;;  %721 = vmatpush.bf16.msrb.mxu1 %v1936_v8 }
  0x83   : > { %737 = vmatpush.bf16.msrb.mxu2 %v1934_v7  ;;  %750 = vmatpush.bf16.msrb.mxu3 %v1936_v8 }
  0x86   : > { %709 = vmatpush.bf16.msrb.mxu0 %v1954_v16  ;;  %722 = vmatpush.bf16.msrb.mxu1 %v1956_v17 }
  0x87   : > { %738 = vmatpush.bf16.msrb.mxu2 %v1954_v16  ;;  %751 = vmatpush.bf16.msrb.mxu3 %v1956_v17 }
  0x8a   : > { %710 = vmatpush.bf16.msrb.mxu0 %v1974_v23  ;;  %723 = vmatpush.bf16.msrb.mxu1 %v1976_v24 }
  0x8b   : > { %739 = vmatpush.bf16.msrb.mxu2 %v1974_v23  ;;  %752 = vmatpush.bf16.msrb.mxu3 %v1976_v24 }
  0x8e   : > { %711 = vmatpush.bf16.msrb.mxu0 %v1994_v29  ;;  %724 = vmatpush.bf16.msrb.mxu1 %v1996_v30 }
  0x8f   : > { %740 = vmatpush.bf16.msrb.mxu2 %v1994_v29  ;;  %753 = vmatpush.bf16.msrb.mxu3 %v1996_v30 }
  0x91   : > { %1303 = vmatmul.msk.bf16.vlgmr.msrb.gmra.mxu0 %vm300_vm1, %v616_v22  ;;  %1304 = vmatmul.msk.bf16.vlgmr.msrb.gmra.mxu1 %vm300_vm1, %v616_v22 }
  0x92   : > { %762 = vmatpush.bf16.msra.mxu0 %v1536_v9  ;;  %775 = vmatpush.bf16.msra.mxu1 %v1538_v10 }
  0x93   : > { %901 = vmatpush.bf16.msra.mxu2 %v1536_v9  ;;  %914 = vmatpush.bf16.msra.mxu3 %v1538_v10 }
  0x94   : > { %1305 = vmatmul.msk.bf16.vlgmr.msrb.gmra.mxu2 %vm300_vm1, %v619_v37  ;;  %1306 = vmatmul.msk.bf16.vlgmr.msrb.gmra.mxu3 %vm300_vm1, %v619_v37 }
  0x96   : > { %763 = vmatpush.bf16.msra.mxu0 %v1864_v50  ;;  %776 = vmatpush.bf16.msra.mxu1 %v1866_v51  ;;  %v2064_v50 = vor.u32 %v1431_v47, %v1346_v46  ;;  %v2066_v51 = vor.u32 %v1430_v48, %v1348_v49 }
  0x97   : > { %902 = vmatpush.bf16.msra.mxu2 %v2020_v38  ;;  %915 = vmatpush.bf16.msra.mxu3 %v2022_v40 }
  0x9a   : > { %764 = vmatpush.bf16.msra.mxu0 %v1890_v56  ;;  %777 = vmatpush.bf16.msra.mxu1 %v1892_v57  ;;  %v2084_v56 = vor.u32 %v1429_v53, %v1338_v52  ;;  %v2086_v57 = vor.u32 %v1428_v54, %v1340_v55 }
  0x9b   : > { %903 = vmatpush.bf16.msra.mxu2 %v2044_v44  ;;  %916 = vmatpush.bf16.msra.mxu3 %v2046_v45 }
  0x9e   : > { %765 = vmatpush.bf16.msra.mxu0 %v1913_v0  ;;  %778 = vmatpush.bf16.msra.mxu1 %v1915_v1  ;;  %v1331_v0 = vor.u32 %v1427_v59, %v1330_v58  ;;  %v1335_v1 = vor.u32 %v1426_v60, %v1332_v61 }
  0x9f   : > { %904 = vmatpush.bf16.msra.mxu2 %v2064_v50  ;;  %917 = vmatpush.bf16.msra.mxu3 %v2066_v51 }
  0xa2   : > { %766 = vmatpush.bf16.msra.mxu0 %v1934_v7  ;;  %779 = vmatpush.bf16.msra.mxu1 %v1936_v8  ;;  %v1323_v7 = vor.u32 %v1425_v4, %v1322_v2  ;;  %v1327_v8 = vor.u32 %v1424_v5, %v1324_v6 }
  0xa3   : > { %905 = vmatpush.bf16.msra.mxu2 %v2084_v56  ;;  %918 = vmatpush.bf16.msra.mxu3 %v2086_v57 }
  0xa6   : > { %767 = vmatpush.bf16.msra.mxu0 %v1954_v16  ;;  %780 = vmatpush.bf16.msra.mxu1 %v1956_v17  ;;  %v1315_v16 = vor.u32 %v1423_v13, %v1314_v11  ;;  %v1319_v17 = vor.u32 %v1422_v14, %v1316_v15 }
  0xa7   : > { %906 = vmatpush.bf16.msra.mxu2 %v1331_v0  ;;  %919 = vmatpush.bf16.msra.mxu3 %v1335_v1 }
  0xaa   : > { %768 = vmatpush.bf16.msra.mxu0 %v1974_v23  ;;  %781 = vmatpush.bf16.msra.mxu1 %v1976_v24  ;;  %v814_v23 = vunpack.c.l.bf16 %v813_v19 }
  0xab   : > { %907 = vmatpush.bf16.msra.mxu2 %v1323_v7  ;;  %920 = vmatpush.bf16.msra.mxu3 %v1327_v8 }
  0xac   : > { %v815_v26 = vsub.f32 %v812_v18, %v814_v23 }
  0xae   : > { %769 = vmatpush.bf16.msra.mxu0 %v1994_v29  ;;  %782 = vmatpush.bf16.msra.mxu1 %v1996_v30  ;;  %v816_v27 = vpack.c.bf16 %v815_v26, %v815_v26 }
  0xaf   : > { %908 = vmatpush.bf16.msra.mxu2 %v1315_v16  ;;  %921 = vmatpush.bf16.msra.mxu3 %v1319_v17 }
  0xb1   : > { %1307 = vmatmul.msk.bf16.vlgmr.msra.gmra.mxu0 %vm300_vm1, %v1909_v63  ;;  %1308 = vmatmul.msk.bf16.vlgmr.msra.gmra.mxu1 %vm300_vm1, %v1909_v63 }
  0xb2   : > { %930 = vmatpush.bf16.msrb.mxu0 %v1536_v9  ;;  %943 = vmatpush.bf16.msrb.mxu1 %v1538_v10 }
  0xb3   : > { %959 = vmatpush.bf16.msrb.mxu2 %v1536_v9  ;;  %972 = vmatpush.bf16.msrb.mxu3 %v1538_v10  ;;  %v320_v9 = vpop.f32.mrf.mxu0  ;;  %v333_v10 = vpop.f32.mrf.mxu1 }
  0xb4   : > { %1368 = vmatmul.msk.bf16.vlgmr.msra.gmra.mxu2 %vm300_vm1, %v813_v19  ;;  %1369 = vmatmul.msk.bf16.vlgmr.msra.gmra.mxu3 %vm300_vm1, %v813_v19 }
  0xb6   : > { %931 = vmatpush.bf16.msrb.mxu0 %v2020_v38  ;;  %944 = vmatpush.bf16.msrb.mxu1 %v2022_v40 }
  0xb7   : > { %960 = vmatpush.bf16.msrb.mxu2 %v2020_v38  ;;  %973 = vmatpush.bf16.msrb.mxu3 %v2022_v40  ;;  %v349_v63 = vpop.f32.mrf.mxu2  ;;  %v362_v20 = vpop.f32.mrf.mxu3 }
  0xb8   : > { %v350_v28 = vadd.f32 %v349_v63, %v320_v9  ;;  %v363_v31 = vadd.f32 %v362_v20, %v333_v10 }
  0xba   : > { %932 = vmatpush.bf16.msrb.mxu0 %v2044_v44  ;;  %945 = vmatpush.bf16.msrb.mxu1 %v2046_v45 }
  0xbb   : > { %961 = vmatpush.bf16.msrb.mxu2 %v2044_v44  ;;  %974 = vmatpush.bf16.msrb.mxu3 %v2046_v45  ;;  %v322_v21 = vpop.f32.mrf.mxu0  ;;  %v335_v22 = vpop.f32.mrf.mxu1 }
  0xbe   : > { %933 = vmatpush.bf16.msrb.mxu0 %v2064_v50  ;;  %946 = vmatpush.bf16.msrb.mxu1 %v2066_v51 }
  0xbf   : > { %962 = vmatpush.bf16.msrb.mxu2 %v2064_v50  ;;  %975 = vmatpush.bf16.msrb.mxu3 %v2066_v51  ;;  %v351_v24 = vpop.f32.mrf.mxu2  ;;  %v364_v25 = vpop.f32.mrf.mxu3 }
  0xc2   : > { %934 = vmatpush.bf16.msrb.mxu0 %v2084_v56  ;;  %947 = vmatpush.bf16.msrb.mxu1 %v2086_v57 }
  0xc3   : > { %963 = vmatpush.bf16.msrb.mxu2 %v2084_v56  ;;  %976 = vmatpush.bf16.msrb.mxu3 %v2086_v57 }
  0xc6   : > { %935 = vmatpush.bf16.msrb.mxu0 %v1331_v0  ;;  %948 = vmatpush.bf16.msrb.mxu1 %v1335_v1 }
  0xc7   : > { %964 = vmatpush.bf16.msrb.mxu2 %v1331_v0  ;;  %977 = vmatpush.bf16.msrb.mxu3 %v1335_v1 }
  0xca   : > { %936 = vmatpush.bf16.msrb.mxu0 %v1323_v7  ;;  %949 = vmatpush.bf16.msrb.mxu1 %v1327_v8 }
  0xcb   : > { %965 = vmatpush.bf16.msrb.mxu2 %v1323_v7  ;;  %978 = vmatpush.bf16.msrb.mxu3 %v1327_v8 }
  0xce   : > { %937 = vmatpush.bf16.msrb.mxu0 %v1315_v16  ;;  %950 = vmatpush.bf16.msrb.mxu1 %v1319_v17  ;;  %v378_v29 = vpop.f32.mrf.mxu0  ;;  %v391_v30 = vpop.f32.mrf.mxu1 }
  0xcf   : > { %966 = vmatpush.bf16.msrb.mxu2 %v1315_v16  ;;  %979 = vmatpush.bf16.msrb.mxu3 %v1319_v17  ;;  %v395_v32 = vadd.f32 %v378_v29, %v350_v28  ;;  %v396_v33 = vadd.f32 %v391_v30, %v363_v31 }
  0xd1   : > { %1370 = vmatmul.msk.bf16.vlgmr.msrb.gmra.mxu0 %vm300_vm1, %v816_v27  ;;  %1371 = vmatmul.msk.bf16.vlgmr.msrb.gmra.mxu1 %vm300_vm1, %v816_v27  ;;  %397 = vst [vmem:[%s1658_s21] sm:$0x3f] %v395_v32 }
  0xd2   : > { %1372 = vmatmul.msk.bf16.vlgmr.msrb.gmra.mxu2 %vm300_vm1, %v2108_v3  ;;  %1373 = vmatmul.msk.bf16.vlgmr.msrb.gmra.mxu3 %vm300_vm1, %v2108_v3  ;;  %398 = vst [vmem:[%s1658_s21 + $0x8] sm:$0x3f] %v396_v33 }
  0xd6   : > { %v380_v39 = vpop.f32.mrf.mxu0  ;;  %v393_v37 = vpop.f32.mrf.mxu1 }
  0xd7   : > { %v516_v34 = vpop.f32.mrf.mxu2  ;;  %v529_v35 = vpop.f32.mrf.mxu3 }
  0xdf   : > { %v518_v38 = vpop.f32.mrf.mxu2  ;;  %v531_v40 = vpop.f32.mrf.mxu3 }
  0xee   : > { %v545_v41 = vpop.f32.mrf.mxu0  ;;  %v558_v42 = vpop.f32.mrf.mxu1 }
  0xef   : > { %v546_v43 = vadd.f32 %v545_v41, %v516_v34  ;;  %v559_v36 = vadd.f32 %v558_v42, %v529_v35 }
  0xf6   : > { %v547_v48 = vpop.f32.mrf.mxu0  ;;  %v560_v49 = vpop.f32.mrf.mxu1 }
  0xf7   : > { %v574_v44 = vpop.f32.mrf.mxu2  ;;  %v587_v45 = vpop.f32.mrf.mxu3 }
  0xf8   : > { %v591_v46 = vadd.f32 %v574_v44, %v546_v43  ;;  %v592_v47 = vadd.f32 %v587_v45, %v559_v36 }
  0xfa   : > { %1244 = vst [vmem:[%s1658_s21 + $0x10] sm:$0x3f] %v591_v46 }
  0xfb   : > { %1245 = vst [vmem:[%s1658_s21 + $0x18] sm:$0x3f] %v592_v47 }
  0xff   : > { %v576_v50 = vpop.f32.mrf.mxu2  ;;  %v589_v51 = vpop.f32.mrf.mxu3 }
 0x10e   : > { %v713_v52 = vpop.f32.mrf.mxu0  ;;  %v726_v53 = vpop.f32.mrf.mxu1 }
 0x116   : > { %v715_v56 = vpop.f32.mrf.mxu0  ;;  %v728_v57 = vpop.f32.mrf.mxu1 }
 0x117   : > { %v742_v54 = vpop.f32.mrf.mxu2  ;;  %v755_v55 = vpop.f32.mrf.mxu3 }
 0x118   : > { %v743_v60 = vadd.f32 %v742_v54, %v713_v52  ;;  %v756_v61 = vadd.f32 %v755_v55, %v726_v53 }
 0x11f   : > { %v744_v58 = vpop.f32.mrf.mxu2  ;;  %v757_v59 = vpop.f32.mrf.mxu3 }
 0x12e   : > { %v771_v62 = vpop.f32.mrf.mxu0  ;;  %v784_v0 = vpop.f32.mrf.mxu1 }
 0x12f   : > { %v788_v1 = vadd.f32 %v771_v62, %v743_v60  ;;  %v789_v2 = vadd.f32 %v784_v0, %v756_v61 }
 0x131   : > { %1309 = vst [vmem:[%s1658_s21 + $0x20] sm:$0x3f] %v788_v1 }
 0x132   : > { %1310 = vst [vmem:[%s1658_s21 + $0x28] sm:$0x3f] %v789_v2 }
 0x136   : > { %v773_v5 = vpop.f32.mrf.mxu0  ;;  %v786_v6 = vpop.f32.mrf.mxu1 }
 0x137   : > { %v910_v3 = vpop.f32.mrf.mxu2  ;;  %v923_v4 = vpop.f32.mrf.mxu3 }
 0x13f   : > { %v912_v7 = vpop.f32.mrf.mxu2  ;;  %v925_v8 = vpop.f32.mrf.mxu3 }
 0x14e   : > { %v939_v11 = vpop.f32.mrf.mxu0  ;;  %v952_v12 = vpop.f32.mrf.mxu1 }
 0x14f   : > { %v940_v13 = vadd.f32 %v939_v11, %v910_v3  ;;  %v953_v14 = vadd.f32 %v952_v12, %v923_v4 }
 0x155   : > { %v968_v15 = vpop.f32.mrf.mxu2  ;;  %v981_v16 = vpop.f32.mrf.mxu3 }
 0x156   : > { %v985_v17 = vadd.f32 %v968_v15, %v940_v13  ;;  %v986_v18 = vadd.f32 %v981_v16, %v953_v14  ;;  %v941_v19 = vpop.f32.mrf.mxu0  ;;  %v954_v9 = vpop.f32.mrf.mxu1 }
 0x158   : > { %1374 = vst [vmem:[%s1658_s21 + $0x30] sm:$0x3f] %v985_v17 }
 0x159   : > { %1375 = vst [vmem:[%s1658_s21 + $0x38] sm:$0x3f] %v986_v18 }
 0x15d   : > { %v970_v10 = vpop.f32.mrf.mxu2  ;;  %v983_v63 = vpop.f32.mrf.mxu3 }
 0x15e PF: > { %s12_s11 = sadd.s32 1, %s1483_s11   ;;  %s2190_s9 = smov %s1479_s10 }
 0x15f   : > { %p9_p5 = scmp.ge.s32.totalorder %s12_s11, 4   ;;  %s2191_s10 = smov %s2193_s12 }
 0x161   :  { %11 = sbr.rel (!%p9_p5) target bundleno = 2 (0x2), region = 64 }

</bundles_post_ra>
